<compile_context>
chip_gen: v7x
topology: tpu7x:2x2x1
jax: 0.10.0
libtpu: 0.0.40
codegen_flags: <defaults>
</compile_context>

<pallas_src>
import functools

import jax
import jax.numpy as jnp
from jax.experimental import pallas as pl
from jax.experimental.pallas import tpu as pltpu

_LANES = 128
_SUBLANES = 8


def _gen_loss_kernel(pred_ref, out_ref, *, loss_type, block_rows):
    """Per-block adversarial-loss partial sums.

    pred_ref: (block_rows, 128) block of flattened predictions (VMEM).
    out_ref : (8, 128) lane-dense partial sum owned by this grid step.
    """
    x = pred_ref[...].astype(jnp.float32)
    if loss_type == "mse":
        # MSELoss against an all-ones target.
        err = (x - 1.0) * (x - 1.0)
    else:
        # BCELoss against an all-ones target: -log(p), log clamped at -100
        # to mimic PyTorch's BCELoss clamping.
        err = -jnp.maximum(jnp.log(x), -100.0)

    # Deferred reduction: fold sublane-groups with pure VPU adds (static slices,
    # no reshape, no XLU). The cross-lane/sublane reduce happens exactly once,
    # outside the kernel, on a tiny array.
    acc = err[0:_SUBLANES, :]
    for i in range(1, block_rows // _SUBLANES):
        acc = acc + err[i * _SUBLANES:(i + 1) * _SUBLANES, :]
    out_ref[...] = acc


def generator_loss(predictions, loss="mse", block_rows=256):
    """loss = adversarial(discriminator_predictions, ones_like(predictions))."""
    assert loss in ("mse", "bce")
    count = predictions.size
    flat = predictions.reshape(-1).astype(jnp.float32)

    rows = pl.cdiv(count, _LANES)
    tr = block_rows
    if rows < tr:
        tr = pl.cdiv(rows, _SUBLANES) * _SUBLANES
    rows_padded = pl.cdiv(rows, tr) * tr
    pad = rows_padded * _LANES - count
    # Pad with the target value 1.0: contributes exactly zero loss for both
    # MSE ((1-1)^2 = 0) and BCE (-log(1) = 0), so no masking is needed.
    flat = jnp.pad(flat, (0, pad), constant_values=1.0)
    pred2d = flat.reshape(rows_padded, _LANES)

    grid = (rows_padded // tr,)
    kernel = functools.partial(_gen_loss_kernel, loss_type=loss, block_rows=tr)
    partials = pl.pallas_call(
        kernel,
        out_shape=jax.ShapeDtypeStruct((grid[0] * _SUBLANES, _LANES), jnp.float32),
        grid_spec=pltpu.PrefetchScalarGridSpec(
            num_scalar_prefetch=0,
            grid=grid,
            in_specs=[pl.BlockSpec((tr, _LANES), lambda i: (i, 0))],
            out_specs=pl.BlockSpec((_SUBLANES, _LANES), lambda i: (i, 0)),
        ),
        compiler_params=pltpu.CompilerParams(
            # Each grid step writes a distinct output block -> safe to shard
            # across TensorCores on v7x; no resident accumulator forcing "arbitrary".
            dimension_semantics=("parallel",),
        ),
    )(pred2d)
    # Final tiny reduction + mean normalization (done once, outside the kernel).
    return jnp.sum(partials) / jnp.float32(count)


if __name__ == "__main__":
    key = jax.random.PRNGKey(0)
    k1, k2, k3, k4 = jax.random.split(key, 4)

    # Reconstructed stereo image pyramid (two scales), B=2, C=4.
    B, C = 2, 4
    recon_pyramid = [
        jax.random.uniform(k1, (B, C, 16, 16), jnp.float32),
        jax.random.uniform(k2, (B, C, 8, 8), jnp.float32),
    ]

    # TODO(synk): the discriminator is an arbitrary external nn.Module passed into
    # forward(); it has no fixed Pallas equivalent, so a tiny deterministic
    # 1x1-conv + sigmoid patch discriminator stands in for it (plain JAX).
    w = jax.random.normal(k3, (C,), jnp.float32) * 0.5
    b = jax.random.normal(k4, (), jnp.float32) * 0.1

    def discriminator(pyramid):
        preds = []
        for img in pyramid:
            logit = jnp.einsum("bchw,c->bhw", img, w) + b
            preds.append(jax.nn.sigmoid(logit).reshape(-1))
        return jnp.concatenate(preds)  # per-patch real/fake scores in (0, 1)

    predictions = discriminator(recon_pyramid)

    # Default 'mse' path (nn.MSELoss vs all-ones labels).
    out_mse = jax.block_until_ready(generator_loss(predictions, loss="mse"))
    ref_mse = jnp.mean((predictions - 1.0) ** 2)
    assert jnp.allclose(out_mse, ref_mse, rtol=1e-6, atol=1e-6), (out_mse, ref_mse)

    # 'bce' path (nn.BCELoss vs all-ones labels).
    out_bce = jax.block_until_ready(generator_loss(predictions, loss="bce"))
    ref_bce = jnp.mean(-jnp.maximum(jnp.log(predictions), -100.0))
    assert jnp.allclose(out_bce, ref_bce, rtol=1e-5, atol=1e-6), (out_bce, ref_bce)

    print("KERNEL_OK")
</pallas_src>

<mosaic_0001>
module attributes {stable_mosaic.version = 11 : i64} {
  func.func @_gen_loss_kernel(%arg0: i32, %arg1: memref<8x128xf32, #tpu.memory_space<vmem>>, %arg2: memref<8x128xf32, #tpu.memory_space<vmem>>) attributes {dimension_semantics = [#tpu.dimension_semantics<parallel>], iteration_bounds = array<i64: 1>, scalar_prefetch = 0 : i64, scratch_operands = 0 : i64, tpu.core_type = #tpu.core_type<tc>, window_params = [{transform_indices = @transform_0, window_bounds = array<i64: 8, 128>}, {transform_indices = @transform_1, window_bounds = array<i64: 8, 128>}]} {
    %c0 = arith.constant 0 : index
    %c0_0 = arith.constant 0 : index
    %0 = vector.load %arg1[%c0, %c0_0] : memref<8x128xf32, #tpu.memory_space<vmem>>, vector<8x128xf32>
    %cst = arith.constant 1.000000e+00 : f32
    %1 = vector.broadcast %cst : f32 to vector<8x128xf32>
    %2 = arith.subf %0, %1 : vector<8x128xf32>
    %cst_1 = arith.constant 1.000000e+00 : f32
    %3 = vector.broadcast %cst_1 : f32 to vector<8x128xf32>
    %4 = arith.subf %0, %3 : vector<8x128xf32>
    %5 = arith.mulf %2, %4 : vector<8x128xf32>
    %c0_2 = arith.constant 0 : index
    %c0_3 = arith.constant 0 : index
    %6 = vector.load %arg2[%c0_2, %c0_3] : memref<8x128xf32, #tpu.memory_space<vmem>>, vector<8x128xf32>
    tpu.vector_store %arg2[%c0_2, %c0_3], %5 {strides = array<i32>} : memref<8x128xf32, #tpu.memory_space<vmem>>, vector<8x128xf32>,
    return
  }
  func.func @transform_0(%arg0: i32) -> (i32, i32) {
    %c0_i32 = arith.constant 0 : i32
    %c0_i32_0 = arith.constant 0 : i32
    return %arg0, %c0_i32 : i32, i32
  }
  func.func @transform_1(%arg0: i32) -> (i32, i32) {
    %c0_i32 = arith.constant 0 : i32
    %c0_i32_0 = arith.constant 0 : i32
    return %arg0, %c0_i32 : i32, i32
  }
}

</mosaic_0001>

<bundles_post_ra>
// kernel: tpu_custom_call.1
= control target key start
LH: loop header
LB: loop body
LE: loop exit
PB: predicated region body
PF: predicated region fallthrough
CT: control target
= control target key end

     0   :  { %6 = vsyncpa [#allocation3], 0  ;;  %s127_s0 = inlined_call_operand.hbm [shape: f32[8,128], index: 0, kind: input, shape index: {}]   ;;  %s128_s1 = inlined_call_operand.hbm [shape: f32[8,128], index: 1, kind: output, shape index: {}]  }
   0x1   :  { %7 = vsyncpa [#allocation4], 0  ;;  %s91_s6 = smov [#allocation2]   ;;  %s43_s10 = scalar_lea.hbm %s127_s0, 128 }
   0x2   :  { %s14_s7 = sshll.u32 %s91_s6, 4  ;;  %p44_p0 = scmp.ne.s32.totalorder %s127_s0, %s43_s10  ;;  %s15_s7 = int_to_ptr.vmem [resolvable:$true] %s14_s7 }
   0x3   :  { %p47_p1 = scmp.lt.u32.totalorder %s43_s10, %s127_s0 }
   0x5   :  { %p49_p2 = pnand %p47_p1, %p44_p0 }
   0x7   :  { %52 = shalt.err (!%p49_p2)
}
   0x8   :  { %s53_s15 = scalar_lea.vmem %s15_s7, 128  ;;  %p58_p4 = scmp.lt.s32.totalorder %s15_s7, %s15_s7 }
   0x9   :  { %p54_p3 = scmp.ne.s32.totalorder %s15_s7, %s53_s15  ;;  %p59_p5 = scmp.lt.s32.totalorder %s53_s15, %s53_s15 }
   0xb   :  { %p60_p6 = por %p59_p5, %p58_p4 }
   0xd   :  { %p61_p7 = pnand %p60_p6, %p54_p3 }
   0xf   :  { %64 = shalt.err (!%p61_p7)
}
  0x10   :  { %17 = dma.hbm_to_vmem [thread:$0]  %s127_s0, 128, %s15_s7, [#allocation3]  }
  0x11   :  { %87 = dma.done.wait [#allocation3], 128  }
  0x12   :  { %88 = vsyncadd [#allocation3], 4294967168  ;;  %v21_v0 = vld [vmem:[#allocation2] sm:$0xff]  ;;  %s92_s18 = smov [#allocation5]  }
  0x13   :  { %s31_s19 = sshll.u32 %s92_s18, 4  ;;  %v40_v1 = vadd.f32 -1.0, %v21_v0  ;;  %s32_s19 = int_to_ptr.vmem [resolvable:$true] %s31_s19 }
  0x14   :  { %s65_s20 = scalar_lea.vmem %s32_s19, 128  ;;  %p70_p9 = scmp.lt.s32.totalorder %s32_s19, %s32_s19 }
  0x15   :  { %v23_v2 = vmul.f32 %v40_v1, %v40_v1  ;;  %p66_p8 = scmp.ne.s32.totalorder %s32_s19, %s65_s20  ;;  %p71_p10 = scmp.lt.s32.totalorder %s65_s20, %s65_s20 }
  0x17   :  { %24 = vst [vmem:[#allocation5] sm:$0xff] %v23_v2  ;;  %p72_p11 = por %p71_p10, %p70_p9 }
  0x19   :  { %p73_p12 = pnand %p72_p11, %p66_p8 }
  0x1b   :  { %76 = shalt.err (!%p73_p12)
}
  0x1c   :  { %s77_s0 = scalar_lea.hbm %s128_s1, 128 }
  0x1d   :  { %p78_p13 = scmp.ne.s32.totalorder %s128_s1, %s77_s0  ;;  %p81_p0 = scmp.lt.u32.totalorder %s77_s0, %s128_s1 }
  0x1f   :  { %p83_p1 = pnand %p81_p0, %p78_p13 }
  0x21   :  { %86 = shalt.err (!%p83_p1)
}
  0x22   :  { %34 = dma.vmem_to_hbm [thread:$0]  %s32_s19, 128, %s128_s1, [#allocation4]  }
  0x23   :  { %89 = dma.done.wait [#allocation4], 128  }
  0x24   :  { %90 = vsyncadd [#allocation4], 4294967168 }
  0x25   :  { %38 = vsyncpa [#allocation3], 1 }
  0x26   :  { %39 = vsyncpa [#allocation4], 1 }

</bundles_post_ra>
